<compile_context>
chip_gen: v5e
topology: v5e:2x2
jax: 0.10.0
libtpu: 0.0.40
codegen_flags: <defaults>
</compile_context>

<pallas_src>
import functools

import jax
import jax.numpy as jnp
from jax.experimental import pallas as pl
from jax.experimental.pallas import tpu as pltpu

IN_FEATURES = 39
HIDDEN = 128
MAX_B_TILE = 4096  # rows per grid step


def ehr_mlp_kernel(x_ref, w1_ref, b1_ref, w2_ref, b2_ref, o_ref):
    # fc1: bf16 x bf16 MXU matmul, f32 accumulation. The bf16 cast of x is done
    # here (free VPU work) so x travels HBM->VMEM exactly once, as f32.
    x = x_ref[...].astype(jnp.bfloat16)
    h = jnp.dot(x, w1_ref[...], preferred_element_type=jnp.float32)
    h = jnp.maximum(h + b1_ref[...], 0.0)
    # Dropout(0.4) is identity at inference time (module eval-mode semantics).
    # TODO(synk): training-mode dropout would use pltpu.prng_seed /
    #             pltpu.prng_random_bits masking with 1/(1-p) scaling.
    # fc2 kept entirely in f32: MXU slack is huge in this memory-bound regime.
    z = jnp.dot(h, w2_ref[...], preferred_element_type=jnp.float32) + b2_ref[...]
    o_ref[...] = z.astype(o_ref.dtype)


@functools.partial(jax.jit, static_argnames=("b_tile",))
def _ehr_mlp_call(x, w1_t, b1_2d, w2_t, b2_2d, b_tile):
    B = x.shape[0]
    grid = (pl.cdiv(B, b_tile),)  # ragged last block: masked stores, no explicit pad
    return pl.pallas_call(
        ehr_mlp_kernel,
        out_shape=jax.ShapeDtypeStruct((B, HIDDEN), jnp.float32),
        grid=grid,
        in_specs=[
            # x tile: K=39 is a full-extent block (allowed by the (8,128) rule).
            pl.BlockSpec((b_tile, IN_FEATURES), lambda i: (i, 0)),
            # Weights/biases: constant block index -> loaded once, VMEM-resident.
            pl.BlockSpec((IN_FEATURES, HIDDEN), lambda i: (0, 0)),   # W1^T (39,128) bf16
            pl.BlockSpec((1, HIDDEN), lambda i: (0, 0)),             # b1 f32
            pl.BlockSpec((HIDDEN, HIDDEN), lambda i: (0, 0)),        # W2^T (128,128) f32
            pl.BlockSpec((1, HIDDEN), lambda i: (0, 0)),             # b2 f32
        ],
        out_specs=pl.BlockSpec((b_tile, HIDDEN), lambda i: (i, 0)),
        compiler_params=pltpu.CompilerParams(
            dimension_semantics=("parallel",)),
    )(x, w1_t, b1_2d, w2_t, b2_2d)


def _round_up(n, m):
    return ((n + m - 1) // m) * m


def _num_tensorcores():
    """2 TensorCores per chip on v7x (and megacore v4/v5p); 1 on v5e/v6e."""
    try:
        kind = jax.devices()[0].device_kind.lower()
    except Exception:
        return 1
    return 2 if any(t in kind for t in ("v7", "v4", "v5p")) else 1


def _batch_tile(B, num_cores):
    """Largest useful row tile (multiple of 16), generation-aware step count."""
    bt = min(MAX_B_TILE, _round_up(B, 16))
    if num_cores > 1 and B >= 32:
        # Multi-core chips: target ~2 grid steps per TensorCore so each core
        # still overlaps prefetch/writeback with compute.
        target_steps = 2 * num_cores
        bt = min(bt, max(16, _round_up(pl.cdiv(B, target_steps), 16)))
    return bt


def prepare_params(w1, b1, w2, b2):
    """One-time layout plumbing, hoisted out of the per-call path.

    w1: (128, 39), b1: (128,), w2: (128, 128), b2: (128,) -- PyTorch layouts.
    """
    w1_t = jnp.asarray(w1, jnp.float32).T.astype(jnp.bfloat16)   # (39, 128)
    w2_t = jnp.asarray(w2, jnp.float32).T                        # (128, 128) f32
    b1_2d = jnp.asarray(b1, jnp.float32).reshape(1, HIDDEN)
    b2_2d = jnp.asarray(b2, jnp.float32).reshape(1, HIDDEN)
    return w1_t, b1_2d, w2_t, b2_2d


def ehr_mlp_forward(x, prepared):
    """x: (B, 39) f32; prepared = prepare_params(w1, b1, w2, b2)."""
    w1_t, b1_2d, w2_t, b2_2d = prepared
    x = jnp.asarray(x, jnp.float32)
    bt = _batch_tile(x.shape[0], _num_tensorcores())
    return _ehr_mlp_call(x, w1_t, b1_2d, w2_t, b2_2d, bt)


def init_params(key):
    """Deterministic init mirroring the PyTorch module's shapes/inits."""
    k1, k2, k3, k4 = jax.random.split(key, 4)
    # kaiming_normal_(fan_in, relu): std = sqrt(2 / fan_in)
    w1 = jax.random.normal(k1, (HIDDEN, IN_FEATURES), jnp.float32) * jnp.sqrt(2.0 / IN_FEATURES)
    w2 = jax.random.normal(k2, (HIDDEN, HIDDEN), jnp.float32) * jnp.sqrt(2.0 / HIDDEN)
    # PyTorch Linear default bias init: U(-1/sqrt(fan_in), 1/sqrt(fan_in))
    b1 = jax.random.uniform(k3, (HIDDEN,), jnp.float32,
                            -1.0 / jnp.sqrt(IN_FEATURES), 1.0 / jnp.sqrt(IN_FEATURES))
    b2 = jax.random.uniform(k4, (HIDDEN,), jnp.float32,
                            -1.0 / jnp.sqrt(HIDDEN), 1.0 / jnp.sqrt(HIDDEN))
    return w1, b1, w2, b2


if __name__ == "__main__":
    key = jax.random.PRNGKey(0)
    kx, kp = jax.random.split(key)

    w1, b1, w2, b2 = init_params(kp)
    prepared = prepare_params(w1, b1, w2, b2)

    # batch=32: single lane-dense tile; batch=100: exercises the ragged
    # (masked-store) last block introduced by the cdiv grid.
    for batch in (32, 100):
        x = jax.random.normal(kx, (batch, IN_FEATURES), jnp.float32)
        out = jax.block_until_ready(ehr_mlp_forward(x, prepared))

        # Pure-JAX f32 reference (dropout identity in eval mode); fc1 runs with
        # bf16 operands in the kernel => relaxed tolerance.
        ref = jnp.maximum(x @ w1.T + b1, 0.0) @ w2.T + b2
        assert out.shape == (batch, HIDDEN)
        assert jnp.allclose(out, ref, atol=2e-2, rtol=2e-2), float(jnp.max(jnp.abs(out - ref)))

    print("KERNEL_OK")
</pallas_src>

<mosaic_0001>
module attributes {stable_mosaic.version = 11 : i64} {
  func.func @ehr_mlp_kernel(%arg0: i32, %arg1: memref<32x39xf32, #tpu.memory_space<vmem>>, %arg2: memref<39x128xbf16, #tpu.memory_space<vmem>>, %arg3: memref<1x128xf32, #tpu.memory_space<vmem>>, %arg4: memref<128x128xf32, #tpu.memory_space<vmem>>, %arg5: memref<1x128xf32, #tpu.memory_space<vmem>>, %arg6: memref<32x128xf32, #tpu.memory_space<vmem>>) attributes {dimension_semantics = [#tpu.dimension_semantics<parallel>], iteration_bounds = array<i64: 1>, scalar_prefetch = 0 : i64, scratch_operands = 0 : i64, tpu.core_type = #tpu.core_type<tc>, window_params = [{transform_indices = @transform_0, window_bounds = array<i64: 32, 39>}, {pipeline_mode = #tpu.pipeline_mode<synchronous>, transform_indices = @transform_1, window_bounds = array<i64: 39, 128>}, {pipeline_mode = #tpu.pipeline_mode<synchronous>, transform_indices = @transform_2, window_bounds = array<i64: 1, 128>}, {pipeline_mode = #tpu.pipeline_mode<synchronous>, transform_indices = @transform_3, window_bounds = array<i64: 128, 128>}, {pipeline_mode = #tpu.pipeline_mode<synchronous>, transform_indices = @transform_4, window_bounds = array<i64: 1, 128>}, {transform_indices = @transform_5, window_bounds = array<i64: 32, 128>}]} {
    %c0 = arith.constant 0 : index
    %c0_0 = arith.constant 0 : index
    %0 = vector.load %arg1[%c0, %c0_0] : memref<32x39xf32, #tpu.memory_space<vmem>>, vector<32x39xf32>
    %1 = arith.truncf %0 : vector<32x39xf32> to vector<32x39xbf16>
    %c0_1 = arith.constant 0 : index
    %c0_2 = arith.constant 0 : index
    %2 = vector.load %arg2[%c0_1, %c0_2] : memref<39x128xbf16, #tpu.memory_space<vmem>>, vector<39x128xbf16>
    %cst = arith.constant dense<0.000000e+00> : vector<32x128xf32>
    %3 = tpu.matmul %1, %2, %cst {dimension_numbers = #tpu.dot_dimension_numbers<[1], [0], [0], [1], [0, 0, 1, 1], [], []>} : vector<32x39xbf16>, vector<39x128xbf16>, vector<32x128xf32> -> vector<32x128xf32>
    %c0_3 = arith.constant 0 : index
    %c0_4 = arith.constant 0 : index
    %4 = vector.load %arg3[%c0_3, %c0_4] : memref<1x128xf32, #tpu.memory_space<vmem>>, vector<1x128xf32>
    %5 = vector.broadcast %4 : vector<1x128xf32> to vector<32x128xf32>
    %6 = arith.addf %3, %5 : vector<32x128xf32>
    %cst_5 = arith.constant 0.000000e+00 : f32
    %7 = vector.broadcast %cst_5 : f32 to vector<32x128xf32>
    %8 = arith.maximumf %6, %7 : vector<32x128xf32>
    %c0_6 = arith.constant 0 : index
    %c0_7 = arith.constant 0 : index
    %9 = vector.load %arg4[%c0_6, %c0_7] : memref<128x128xf32, #tpu.memory_space<vmem>>, vector<128x128xf32>
    %cst_8 = arith.constant dense<0.000000e+00> : vector<32x128xf32>
    %10 = tpu.matmul %8, %9, %cst_8 {dimension_numbers = #tpu.dot_dimension_numbers<[1], [0], [0], [1], [0, 0, 1, 1], [], []>} : vector<32x128xf32>, vector<128x128xf32>, vector<32x128xf32> -> vector<32x128xf32>
    %c0_9 = arith.constant 0 : index
    %c0_10 = arith.constant 0 : index
    %11 = vector.load %arg5[%c0_9, %c0_10] : memref<1x128xf32, #tpu.memory_space<vmem>>, vector<1x128xf32>
    %12 = vector.broadcast %11 : vector<1x128xf32> to vector<32x128xf32>
    %13 = arith.addf %10, %12 : vector<32x128xf32>
    %c0_11 = arith.constant 0 : index
    %c0_12 = arith.constant 0 : index
    %14 = vector.load %arg6[%c0_11, %c0_12] : memref<32x128xf32, #tpu.memory_space<vmem>>, vector<32x128xf32>
    tpu.vector_store %arg6[%c0_11, %c0_12], %13 {strides = array<i32>} : memref<32x128xf32, #tpu.memory_space<vmem>>, vector<32x128xf32>,
    return
  }
  func.func @transform_0(%arg0: i32) -> (i32, i32) {
    %c0_i32 = arith.constant 0 : i32
    %c0_i32_0 = arith.constant 0 : i32
    return %arg0, %c0_i32 : i32, i32
  }
  func.func @transform_1(%arg0: i32) -> (i32, i32) {
    %c0_i32 = arith.constant 0 : i32
    %c0_i32_0 = arith.constant 0 : i32
    %c0_i32_1 = arith.constant 0 : i32
    return %c0_i32, %c0_i32_0 : i32, i32
  }
  func.func @transform_2(%arg0: i32) -> (i32, i32) {
    %c0_i32 = arith.constant 0 : i32
    %c0_i32_0 = arith.constant 0 : i32
    %c0_i32_1 = arith.constant 0 : i32
    return %c0_i32, %c0_i32_0 : i32, i32
  }
  func.func @transform_3(%arg0: i32) -> (i32, i32) {
    %c0_i32 = arith.constant 0 : i32
    %c0_i32_0 = arith.constant 0 : i32
    %c0_i32_1 = arith.constant 0 : i32
    return %c0_i32, %c0_i32_0 : i32, i32
  }
  func.func @transform_4(%arg0: i32) -> (i32, i32) {
    %c0_i32 = arith.constant 0 : i32
    %c0_i32_0 = arith.constant 0 : i32
    %c0_i32_1 = arith.constant 0 : i32
    return %c0_i32, %c0_i32_0 : i32, i32
  }
  func.func @transform_5(%arg0: i32) -> (i32, i32) {
    %c0_i32 = arith.constant 0 : i32
    %c0_i32_0 = arith.constant 0 : i32
    return %arg0, %c0_i32 : i32, i32
  }
}

</mosaic_0001>

<bundles_post_ra>
// kernel: _ehr_mlp_call.1
= control target key start
LH: loop header
LB: loop body
LE: loop exit
PB: predicated region body
PF: predicated region fallthrough
CT: control target
= control target key end

     0   :  { %10 = vsyncpa [#allocation3], 0  ;;  %s434_s0 = inlined_call_operand.hbm [shape: f32[32,39], index: 0, kind: input, shape index: {}]   ;;  %s435_s1 = inlined_call_operand.hbm [shape: bf16[39,128], index: 1, kind: input, shape index: {}]   ;;  %s436_s2 = inlined_call_operand.vmem [shape: f32[1,128], index: 2, kind: input, shape index: {}]   ;;  %s437_s3 = inlined_call_operand.hbm [shape: f32[128,128], index: 3, kind: input, shape index: {}]   ;;  %s438_s4 = inlined_call_operand.vmem [shape: f32[1,128], index: 4, kind: input, shape index: {}]   ;;  %s439_s5 = inlined_call_operand.hbm [shape: f32[32,128], index: 5, kind: output, shape index: {}]  }
   0x1   :  { %11 = vsyncpa [#allocation6], 0  ;;  %s30_s20 = sshll.u32 %s435_s1, 4  ;;  %s31_s20 = int_to_ptr.hbm [resolvable:$true] %s30_s20 }
   0x2   :  { %12 = vsyncpa [#allocation4], 0  ;;  %s366_s21 = smov [#allocation5]   ;;  %s17_s25 = sshll.u32 %s434_s0, 4  ;;  %s18_s25 = int_to_ptr.hbm [resolvable:$true] %s17_s25 }
   0x3   :  { %s32_s22 = sshll.u32 %s366_s21, 4  ;;  %s367_s26 = smov 64   ;;  %s33_s22 = int_to_ptr.vmem [resolvable:$true] %s32_s22 }
   0x4   :  { %s368_s27 = smov 4   ;;  %s369_s28 = smov [#allocation2]  }
   0x5   :  { %38 = dma.hbm_to_vmem [thread:$0]  %s31_s20, 320, %s33_s22, [#allocation6], %s367_s26, %s367_s26, %s368_s27  }
   0x6   :  { %s19_s29 = sshll.u32 %s369_s28, 4  ;;  %s370_s30 = smov 128   ;;  %s20_s29 = int_to_ptr.vmem [resolvable:$true] %s19_s29 }
   0x7   :  { %s371_s6 = smov 8   ;;  %s45_s8 = sshll.u32 %s437_s3, 4  ;;  %s46_s8 = int_to_ptr.hbm [resolvable:$true] %s45_s8 }
   0x8   :  { %25 = dma.hbm_to_vmem [thread:$0]  %s18_s25, 512, %s20_s29, [#allocation3], %s370_s30, %s370_s30, %s371_s6  }
   0x9   :  { %s372_s9 = smov [#allocation7]  }
   0xa   :  { %s47_s0 = sshll.u32 %s372_s9, 4  ;;  %s48_s0 = int_to_ptr.vmem [resolvable:$true] %s47_s0 }
   0xb   :  { %53 = dma.hbm_to_vmem [thread:$0]  %s46_s8, 2048, %s48_s0, [#allocation6], %s370_s30, %s370_s30, %s371_s6  }
   0xc   :  { %360 = dma.done.wait [#allocation3], 512  }
   0xd   :  { %361 = vsyncadd [#allocation3], 4294966784 }
   0xe   :  { %362 = dma.done.wait [#allocation6], 2368  }
   0xf   :  { %363 = vsyncadd [#allocation6], 4294964928  ;;  %vm106_vm0 = vcmask 1042432   ;;  %vm107_vm1 = vcmask 1043456   ;;  %v373_v0 = vmov 65535   ;;  %v151_v5 = vld [vmem:[#allocation7 + $0x78] sm:$0xff] }
  0x10   :  { %v108_v1 = vsel %vm106_vm0, 4294967295, %v373_v0  ;;  %v79_v2 = vld [vmem:[#allocation5 + $0x10] sm:$0xf]  ;;  %v150_v6 = vld [vmem:[#allocation7 + $0x70] sm:$0xff]  ;;  %156 = vmatpush.msra.mxu1 %v151_v5  ;;  %221 = vmatpush.msra.mxu2 %v151_v5  ;;  %v149_v8 = vld [vmem:[#allocation7 + $0x68] sm:$0xff]  ;;  %vm99_vm2 = vcmask 318464  }
  0x11   :  { %v93_v3 = vunpack.c.l.b16 %v79_v2  ;;  %v109_v4 = vsel %vm107_vm1, %v108_v1, 0  ;;  %222 = vmatpush.msra.mxu3 %v151_v5  ;;  %v148_v10 = vld [vmem:[#allocation7 + $0x60] sm:$0xff]  ;;  %v220_v11 = vld [vmem:[#allocation5 + $0x8] sm:$0xff]  ;;  %v219_v14 = vld [vmem:[#allocation5] sm:$0xff]  ;;  %s195_s16 = sshll.u32 %s439_s5, 4  ;;  %s196_s16 = int_to_ptr.hbm [resolvable:$true] %s195_s16 }
  0x12   :  { %157 = vmatpush.msra.mxu1 %v150_v6  ;;  %223 = vmatpush.msra.mxu2 %v150_v6  ;;  %v147_v12 = vld [vmem:[#allocation7 + $0x58] sm:$0xff]  ;;  %v146_v13 = vld [vmem:[#allocation7 + $0x50] sm:$0xff]  ;;  %v145_v17 = vld [vmem:[#allocation7 + $0x48] sm:$0xff] }
  0x13   :  { %v96_v7 = vpack.c.b16 %v93_v3, %v93_v3  ;;  %224 = vmatpush.msra.mxu3 %v150_v6  ;;  %v69_v15 = vld [vmem:[#allocation2] sm:$0xff]  ;;  %v70_v16 = vld [vmem:[#allocation2 + $0x8] sm:$0xff]  ;;  %v144_v19 = vld [vmem:[#allocation7 + $0x40] sm:$0xff] }
  0x14   :  { %158 = vmatpush.msra.mxu1 %v149_v8  ;;  %225 = vmatpush.msra.mxu2 %v149_v8  ;;  %v73_v18 = vpack.c.bf16 %v70_v16, %v69_v15  ;;  %v143_v20 = vld [vmem:[#allocation7 + $0x38] sm:$0xff]  ;;  %v142_v21 = vld [vmem:[#allocation7 + $0x30] sm:$0xff]  ;;  %v141_v22 = vld [vmem:[#allocation7 + $0x28] sm:$0xff] }
  0x15   :  { %v111_v9 = vand.u32 %v109_v4, %v96_v7  ;;  %226 = vmatpush.msra.mxu3 %v149_v8  ;;  %v140_v23 = vld [vmem:[#allocation7 + $0x20] sm:$0xff]  ;;  %v139_v24 = vld [vmem:[#allocation7 + $0x18] sm:$0xff]  ;;  %v138_v28 = vld [vmem:[#allocation7 + $0x10] sm:$0xff] }
  0x16   :  { %159 = vmatpush.msra.mxu1 %v148_v10  ;;  %227 = vmatpush.msra.mxu2 %v148_v10  ;;  %v71_v25 = vld [vmem:[#allocation2 + $0x10] sm:$0xff]  ;;  %v72_v26 = vld [vmem:[#allocation2 + $0x18] sm:$0xff]  ;;  %v262_v31 = vld [vmem:[%s436_s2] ss:$0 sm:$0xff]  ;;  %s374_s2 = smov [#allocation8]  }
  0x17   :  { %118 = vmatpush.bf16.msra.mxu0 %v111_v9  ;;  %228 = vmatpush.msra.mxu3 %v148_v10  ;;  %v74_v27 = vpack.c.bf16 %v72_v26, %v71_v25  ;;  %v137_v29 = vld [vmem:[#allocation7 + $0x8] sm:$0xff]  ;;  %v136_v30 = vld [vmem:[#allocation7] sm:$0xff]  ;;  %s193_s13 = sshll.u32 %s374_s2, 4  ;;  %s194_s13 = int_to_ptr.vmem [resolvable:$true] %s193_s13 }
  0x18   :  { %160 = vmatpush.msra.mxu1 %v147_v12  ;;  %229 = vmatpush.msra.mxu2 %v147_v12  ;;  %v263_v44 = vld [vmem:[%s438_s4] ss:$0 sm:$0xff] }
  0x19   :  { %230 = vmatpush.msra.mxu3 %v147_v12 }
  0x1a   :  { %161 = vmatpush.msra.mxu1 %v146_v13  ;;  %231 = vmatpush.msra.mxu2 %v146_v13 }
  0x1b   :  { %119 = vmatpush.bf16.msra.mxu0 %v220_v11  ;;  %232 = vmatpush.msra.mxu3 %v146_v13 }
  0x1c   :  { %162 = vmatpush.msra.mxu1 %v145_v17  ;;  %233 = vmatpush.msra.mxu2 %v145_v17 }
  0x1d   :  { %234 = vmatpush.msra.mxu3 %v145_v17 }
  0x1e   :  { %163 = vmatpush.msra.mxu1 %v144_v19  ;;  %235 = vmatpush.msra.mxu2 %v144_v19 }
  0x1f   :  { %120 = vmatpush.bf16.msra.mxu0 %v219_v14  ;;  %236 = vmatpush.msra.mxu3 %v144_v19 }
  0x20   :  { %164 = vmatpush.msra.mxu1 %v143_v20  ;;  %237 = vmatpush.msra.mxu2 %v143_v20 }
  0x21   :  { %238 = vmatpush.msra.mxu3 %v143_v20 }
  0x22   :  { %217 = vmatmul.msk.bf16.vlgmr.msra.gmra.mxu0 %vm99_vm2, %v73_v18  ;;  %165 = vmatpush.msra.mxu1 %v142_v21 }
  0x23   :  { %239 = vmatpush.msra.mxu2 %v142_v21  ;;  %240 = vmatpush.msra.mxu3 %v142_v21 }
  0x24   :  { %166 = vmatpush.msra.mxu1 %v141_v22 }
  0x25   :  { %241 = vmatpush.msra.mxu2 %v141_v22  ;;  %242 = vmatpush.msra.mxu3 %v141_v22 }
  0x26   :  { %167 = vmatpush.msra.mxu1 %v140_v23 }
  0x27   :  { %243 = vmatpush.msra.mxu2 %v140_v23  ;;  %244 = vmatpush.msra.mxu3 %v140_v23 }
  0x28   :  { %168 = vmatpush.msra.mxu1 %v139_v24 }
  0x29   :  { %245 = vmatpush.msra.mxu2 %v139_v24  ;;  %246 = vmatpush.msra.mxu3 %v139_v24 }
  0x2a   :  { %169 = vmatpush.msra.mxu1 %v138_v28 }
  0x2b   :  { %247 = vmatpush.msra.mxu2 %v138_v28  ;;  %248 = vmatpush.msra.mxu3 %v138_v28 }
  0x2c   :  { %170 = vmatpush.msra.mxu1 %v137_v29 }
  0x2d   :  { %249 = vmatpush.msra.mxu2 %v137_v29  ;;  %250 = vmatpush.msra.mxu3 %v137_v29 }
  0x2e   :  { %171 = vmatpush.msra.mxu1 %v136_v30 }
  0x2f   :  { %251 = vmatpush.msra.mxu2 %v136_v30  ;;  %252 = vmatpush.msra.mxu3 %v136_v30 }
  0x32   :  { %218 = vmatmul.msk.bf16.gmra.mxu0 %vm99_vm2, %v74_v27 }
  0x9f   :  { %v122_v32 = vpop.f32.mrf.mxu0 }
  0xa0   :  { %v123_v33 = vadd.f32 %v262_v31, %v122_v32 }
  0xa2   :  { %v132_v34 = vmax.f32 %v123_v33, 0.0 }
  0xa4   :  { %172 = vmatmul.f32.vlgmr.msra.gmra.mxu1 %v132_v34 }
  0xa7   :  { %v124_v35 = vpop.f32.mrf.mxu0 }
  0xa8   :  { %v125_v36 = vadd.f32 %v262_v31, %v124_v35 }
  0xaa   :  { %v133_v37 = vmax.f32 %v125_v36, 0.0 }
  0xac   :  { %175 = vmatmul.f32.vlgmr.msra.gmra.mxu2 %v133_v37 }
  0xaf   :  { %v127_v38 = vpop.f32.mrf.mxu0 }
  0xb0   :  { %v128_v39 = vadd.f32 %v262_v31, %v127_v38 }
  0xb2   :  { %v134_v40 = vmax.f32 %v128_v39, 0.0 }
  0xb4   :  { %178 = vmatmul.f32.vlgmr.msra.gmra.mxu3 %v134_v40 }
  0xb7   :  { %v129_v41 = vpop.f32.mrf.mxu0 }
  0xb8   :  { %v130_v42 = vadd.f32 %v262_v31, %v129_v41 }
  0xba   :  { %v135_v43 = vmax.f32 %v130_v42, 0.0 }
  0xbc   :  { %181 = vmatmul.f32.gmra.mxu3 %v135_v43 }
 0x121   :  { %v173_v45 = vpop.f32.mrf.mxu1 }
 0x122   :  { %v174_v46 = vadd.f32 %v263_v44, %v173_v45 }
 0x124   :  { %185 = vst [vmem:[#allocation8] sm:$0xff] %v174_v46 }
 0x12f   :  { %v176_v47 = vpop.f32.mrf.mxu2 }
 0x130   :  { %v177_v48 = vadd.f32 %v263_v44, %v176_v47 }
 0x132   :  { %186 = vst [vmem:[#allocation8 + $0x8] sm:$0xff] %v177_v48 }
 0x137   :  { %v179_v49 = vpop.f32.mrf.mxu3 }
 0x138   :  { %v180_v50 = vadd.f32 %v263_v44, %v179_v49 }
 0x13a   :  { %187 = vst [vmem:[#allocation8 + $0x10] sm:$0xff] %v180_v50 }
 0x13f   :  { %v182_v51 = vpop.f32.mrf.mxu3 }
 0x140   :  { %v183_v52 = vadd.f32 %v263_v44, %v182_v51 }
 0x142   :  { %188 = vst [vmem:[#allocation8 + $0x18] sm:$0xff] %v183_v52 }
 0x143   :  { %201 = dma.vmem_to_hbm [thread:$0]  %s194_s13, 512, %s196_s16, [#allocation4], %s370_s30, %s370_s30, %s371_s6  }
 0x144   :  { %364 = dma.done.wait [#allocation4], 512  }
 0x145   :  { %365 = vsyncadd [#allocation4], 4294966784 }
 0x146   :  { %206 = vsyncpa [#allocation3], 1 }
 0x147   :  { %207 = vsyncpa [#allocation6], 1 }
 0x148   :  { %208 = vsyncpa [#allocation4], 1 }

</bundles_post_ra>
